<compile_context>
chip_gen: v6e
topology: v6e:2x2x1
jax: 0.10.0
libtpu: 0.0.40
codegen_flags: <defaults>
</compile_context>

<pallas_src>
import math

import jax
import jax.numpy as jnp
from jax import lax
from jax.experimental import pallas as pl
from jax.experimental.pallas import tpu as pltpu


# ----------------------------- configuration ------------------------------
D_HIDN = 32            # d_hidn
N_HEAD = 4             # n_head
D_HEAD = 8             # d_head  (n_head * d_head == d_hidn, like the original)
HD = N_HEAD * D_HEAD   # 32
D_FF = 64              # d_ff
SEQ = 8                # sequence length
BATCH = 2
LN_EPS = 1e-12

# rows of the packed (8, 128) small-parameter slab
_ROW_BQKV, _ROW_BO, _ROW_G1, _ROW_BE1, _ROW_B1, _ROW_B2, _ROW_G3, _ROW_BE3 = range(8)


def _layer_norm(x, gamma, beta, eps=LN_EPS):
    mu = jnp.mean(x, axis=-1, keepdims=True)
    var = jnp.mean((x - mu) ** 2, axis=-1, keepdims=True)   # biased, like torch
    return (x - mu) * lax.rsqrt(var + eps) * gamma + beta


def _gelu_exact(x):
    # torch.nn.functional.gelu default (erf based)
    return 0.5 * x * (1.0 + lax.erf(x * (1.0 / math.sqrt(2.0))))


# ------------------------------- kernel -----------------------------------
def _decoder_body(x_ref, mask_ref, wqkv_ref, wo_ref, w1_ref, w2_ref, vec_ref,
                  out_ref, attn_ref):
    """One batch element per grid step. attn_ref may be None (fast path)."""
    x = x_ref[...]                       # (S, D) f32
    mask = mask_ref[0]                   # (S, S); 1.0 == masked position

    # ---------- fused QKV projection: single MXU pass ----------
    bqkv = vec_ref[_ROW_BQKV:_ROW_BQKV + 1, :3 * HD]              # (1, 3*H*Dh)
    qkv = jnp.dot(x, wqkv_ref[...], preferred_element_type=jnp.float32) + bqkv
    q = qkv[:, :HD]                      # scale already folded into Q weights
    k = qkv[:, HD:2 * HD]
    v = qkv[:, 2 * HD:3 * HD]

    # ---------- per-head scaled dot-product attention ----------
    ctx_heads = []
    probs = []
    for h in range(N_HEAD):              # static unroll, H = 4
        sl = slice(h * D_HEAD, (h + 1) * D_HEAD)
        qh, kh, vh = q[:, sl], k[:, sl], v[:, sl]
        s = lax.dot_general(qh, kh, (((1,), (1,)), ((), ())),
                            preferred_element_type=jnp.float32)   # (S, S)
        s = jnp.where(mask > 0.5, jnp.float32(-1e9), s)           # masked_fill_
        m = jnp.max(s, axis=-1, keepdims=True)
        e = jnp.exp(s - m)
        p = e / jnp.sum(e, axis=-1, keepdims=True)     # exact divide: rows sum to 1
        probs.append(p)
        ctx_heads.append(jnp.dot(p, vh, preferred_element_type=jnp.float32))

    if attn_ref is not None:             # optional debug output, one bulk store
        attn_ref[...] = jnp.concatenate(probs, axis=0)            # (H*S, S)

    # ---------- merged output projection (one MXU pass) ----------
    ctx = jnp.concatenate(ctx_heads, axis=1)                      # (S, H*Dh)
    bo = vec_ref[_ROW_BO:_ROW_BO + 1, :D_HIDN]
    attn_out = jnp.dot(ctx, wo_ref[...], preferred_element_type=jnp.float32) + bo

    # residual + LayerNorm1
    g1 = vec_ref[_ROW_G1:_ROW_G1 + 1, :D_HIDN]
    be1 = vec_ref[_ROW_BE1:_ROW_BE1 + 1, :D_HIDN]
    x1 = _layer_norm(x + attn_out, g1, be1)

    # ---------- position-wise FFN (1x1 convs == linears) ----------
    b1 = vec_ref[_ROW_B1:_ROW_B1 + 1, :D_FF]
    b2 = vec_ref[_ROW_B2:_ROW_B2 + 1, :D_HIDN]
    h1 = _gelu_exact(jnp.dot(x1, w1_ref[...], preferred_element_type=jnp.float32) + b1)
    h2 = jnp.dot(h1, w2_ref[...], preferred_element_type=jnp.float32) + b2

    # residual + LayerNorm3
    g3 = vec_ref[_ROW_G3:_ROW_G3 + 1, :D_HIDN]
    be3 = vec_ref[_ROW_BE3:_ROW_BE3 + 1, :D_HIDN]
    out_ref[...] = _layer_norm(x1 + h2, g3, be3).astype(out_ref.dtype)


def decoder_kernel_with_attn(x_ref, mask_ref, wqkv_ref, wo_ref, w1_ref, w2_ref,
                             vec_ref, out_ref, attn_ref):
    _decoder_body(x_ref, mask_ref, wqkv_ref, wo_ref, w1_ref, w2_ref, vec_ref,
                  out_ref, attn_ref)


def decoder_kernel(x_ref, mask_ref, wqkv_ref, wo_ref, w1_ref, w2_ref,
                   vec_ref, out_ref):
    _decoder_body(x_ref, mask_ref, wqkv_ref, wo_ref, w1_ref, w2_ref, vec_ref,
                  out_ref, None)


# ------------------------------- wrapper -----------------------------------
def prepare_params(params):
    """One-time host-side weight transform: fused QKV weight with the
    1/sqrt(d_head) scale folded into Q, and all 1-row params packed into a
    single (8, 128) f32 slab."""
    scale = 1.0 / math.sqrt(D_HEAD)
    wqkv = jnp.concatenate(
        [params["wq"] * scale, params["wk"], params["wv"]], axis=1)   # (D, 3*H*Dh)
    bqkv = jnp.concatenate(
        [params["bq"] * scale, params["bk"], params["bv"]], axis=1)   # (1, 3*H*Dh)

    def row(v):
        v = jnp.asarray(v, jnp.float32).reshape(-1)
        return jnp.pad(v, (0, 128 - v.shape[0]))

    vec = jnp.stack(
        [row(bqkv), row(params["bo"]), row(params["g1"]), row(params["be1"]),
         row(params["b1"]), row(params["b2"]), row(params["g3"]), row(params["be3"])],
        axis=0)                                                        # (8, 128)

    return {"wqkv": wqkv, "wo": params["wo"], "w1": params["w1"],
            "w2": params["w2"], "vec": vec}


def _in_specs(S):
    const2 = lambda b: (0, 0)
    return [
        pl.BlockSpec((S, D_HIDN), lambda b: (b, 0)),        # x: one batch element
        pl.BlockSpec((1, S, S), lambda b: (b, 0, 0)),       # mask (no head repeat)
        pl.BlockSpec((D_HIDN, 3 * HD), const2),             # fused QKV weight (resident)
        pl.BlockSpec((HD, D_HIDN), const2),                 # output projection
        pl.BlockSpec((D_HIDN, D_FF), const2),               # FFN conv1 weight
        pl.BlockSpec((D_FF, D_HIDN), const2),               # FFN conv2 weight
        pl.BlockSpec((8, 128), const2),                     # packed small params
    ]


def decoder_layer(x, mask, prep, return_attn_prob=True):
    """x: (B, S, D) f32; mask: (B, S, S) f32 (1.0 == masked position)."""
    B, S, D = x.shape
    x_tok = x.reshape(B * S, D)          # the only per-call wrapper-side op

    in_specs = _in_specs(S)
    out_spec = pl.BlockSpec((S, D_HIDN), lambda b: (b, 0))
    cp = pltpu.CompilerParams(dimension_semantics=("parallel",))
    args = (x_tok, mask, prep["wqkv"], prep["wo"], prep["w1"], prep["w2"], prep["vec"])

    if return_attn_prob:
        out_flat, attn_flat = pl.pallas_call(
            decoder_kernel_with_attn,
            grid=(B,),
            in_specs=in_specs,
            out_specs=[out_spec,
                       pl.BlockSpec((N_HEAD * S, S), lambda b: (b, 0))],
            out_shape=[jax.ShapeDtypeStruct((B * S, D), jnp.float32),
                       jax.ShapeDtypeStruct((B * N_HEAD * S, S), jnp.float32)],
            compiler_params=cp,
        )(*args)
        return out_flat.reshape(B, S, D), attn_flat.reshape(B, N_HEAD, S, S)

    out_flat = pl.pallas_call(
        decoder_kernel,
        grid=(B,),
        in_specs=in_specs,
        out_specs=out_spec,
        out_shape=jax.ShapeDtypeStruct((B * S, D), jnp.float32),
        compiler_params=cp,
    )(*args)
    return out_flat.reshape(B, S, D), None


# ----------------------------- pure-JAX reference ------------------------------
def decoder_layer_ref(x, mask, p):
    B, S, D = x.shape
    q = x @ p["wq"] + p["bq"]
    k = x @ p["wk"] + p["bk"]
    v = x @ p["wv"] + p["bv"]

    def split(t):  # (B,S,H*Dh) -> (B,H,S,Dh)
        return t.reshape(B, S, N_HEAD, D_HEAD).transpose(0, 2, 1, 3)

    qh, kh, vh = split(q), split(k), split(v)
    scores = jnp.einsum("bhqd,bhkd->bhqk", qh, kh) / math.sqrt(D_HEAD)
    scores = jnp.where(mask[:, None] > 0.5, -1e9, scores)
    prob = jax.nn.softmax(scores, axis=-1)
    ctx = jnp.einsum("bhqk,bhkd->bhqd", prob, vh)
    ctx = ctx.transpose(0, 2, 1, 3).reshape(B, S, N_HEAD * D_HEAD)
    attn_out = ctx @ p["wo"] + p["bo"]

    def ln(t, g, b):
        mu = jnp.mean(t, axis=-1, keepdims=True)
        var = jnp.mean((t - mu) ** 2, axis=-1, keepdims=True)
        return (t - mu) * lax.rsqrt(var + LN_EPS) * g + b

    x1 = ln(x + attn_out, p["g1"], p["be1"])
    t1 = x1 @ p["w1"] + p["b1"]
    h1 = 0.5 * t1 * (1.0 + lax.erf(t1 / math.sqrt(2.0)))
    h2 = h1 @ p["w2"] + p["b2"]
    y = ln(x1 + h2, p["g3"], p["be3"])
    return y, prob


# ----------------------------- driver ------------------------------
if __name__ == "__main__":
    key = jax.random.PRNGKey(0)
    ks = jax.random.split(key, 16)

    s = 0.05
    params = {
        "wq": jax.random.normal(ks[0], (D_HIDN, HD), jnp.float32) * s,
        "bq": jax.random.normal(ks[1], (1, HD), jnp.float32) * s,
        "wk": jax.random.normal(ks[2], (D_HIDN, HD), jnp.float32) * s,
        "bk": jax.random.normal(ks[3], (1, HD), jnp.float32) * s,
        "wv": jax.random.normal(ks[4], (D_HIDN, HD), jnp.float32) * s,
        "bv": jax.random.normal(ks[5], (1, HD), jnp.float32) * s,
        "wo": jax.random.normal(ks[6], (HD, D_HIDN), jnp.float32) * s,
        "bo": jax.random.normal(ks[7], (1, D_HIDN), jnp.float32) * s,
        "g1": jnp.ones((1, D_HIDN), jnp.float32),
        "be1": jnp.zeros((1, D_HIDN), jnp.float32),
        "w1": jax.random.normal(ks[8], (D_HIDN, D_FF), jnp.float32) * s,
        "b1": jax.random.normal(ks[9], (1, D_FF), jnp.float32) * s,
        "w2": jax.random.normal(ks[10], (D_FF, D_HIDN), jnp.float32) * s,
        "b2": jax.random.normal(ks[11], (1, D_HIDN), jnp.float32) * s,
        "g3": jnp.ones((1, D_HIDN), jnp.float32),
        "be3": jnp.zeros((1, D_HIDN), jnp.float32),
    }

    x = jax.random.normal(ks[12], (BATCH, SEQ, D_HIDN), jnp.float32)
    # causal (subsequent) mask: 1.0 where attention is disallowed
    causal = jnp.triu(jnp.ones((SEQ, SEQ), jnp.float32), k=1)
    mask = jnp.broadcast_to(causal, (BATCH, SEQ, SEQ))

    # TODO(synk): dropout layers are identity here (inference mode); training-time
    # stochastic dropout is not reproduced.

    prep = prepare_params(params)            # one-time host-side weight transform

    out, attn = decoder_layer(x, mask, prep, return_attn_prob=True)
    out = jax.block_until_ready(out)
    attn = jax.block_until_ready(attn)

    out_fast, _ = decoder_layer(x, mask, prep, return_attn_prob=False)  # fast path
    out_fast = jax.block_until_ready(out_fast)

    ref_out, ref_attn = decoder_layer_ref(x, mask, params)
    assert jnp.allclose(out, ref_out, atol=5e-4, rtol=5e-4), "output mismatch"
    assert jnp.allclose(attn, ref_attn, atol=5e-4, rtol=5e-4), "attn mismatch"
    assert jnp.allclose(out_fast, ref_out, atol=5e-4, rtol=5e-4), "fast-path mismatch"

    print("KERNEL_OK")
</pallas_src>

<mosaic_0001>
module attributes {stable_mosaic.version = 11 : i64} {
  func.func @decoder_kernel_with_attn(%arg0: i32, %arg1: memref<8x32xf32, #tpu.memory_space<vmem>>, %arg2: memref<1x8x8xf32, #tpu.memory_space<vmem>>, %arg3: memref<32x96xf32, #tpu.memory_space<vmem>>, %arg4: memref<32x32xf32, #tpu.memory_space<vmem>>, %arg5: memref<32x64xf32, #tpu.memory_space<vmem>>, %arg6: memref<64x32xf32, #tpu.memory_space<vmem>>, %arg7: memref<8x128xf32, #tpu.memory_space<vmem>>, %arg8: memref<8x32xf32, #tpu.memory_space<vmem>>, %arg9: memref<32x8xf32, #tpu.memory_space<vmem>>) attributes {dimension_semantics = [#tpu.dimension_semantics<parallel>], iteration_bounds = array<i64: 2>, scalar_prefetch = 0 : i64, scratch_operands = 0 : i64, tpu.core_type = #tpu.core_type<tc>, window_params = [{transform_indices = @transform_0, window_bounds = array<i64: 8, 32>}, {transform_indices = @transform_1, window_bounds = array<i64: 1, 8, 8>}, {pipeline_mode = #tpu.pipeline_mode<synchronous>, transform_indices = @transform_2, window_bounds = array<i64: 32, 96>}, {pipeline_mode = #tpu.pipeline_mode<synchronous>, transform_indices = @transform_3, window_bounds = array<i64: 32, 32>}, {pipeline_mode = #tpu.pipeline_mode<synchronous>, transform_indices = @transform_4, window_bounds = array<i64: 32, 64>}, {pipeline_mode = #tpu.pipeline_mode<synchronous>, transform_indices = @transform_5, window_bounds = array<i64: 64, 32>}, {pipeline_mode = #tpu.pipeline_mode<synchronous>, transform_indices = @transform_6, window_bounds = array<i64: 8, 128>}, {transform_indices = @transform_7, window_bounds = array<i64: 8, 32>}, {transform_indices = @transform_8, window_bounds = array<i64: 32, 8>}]} {
    %c0 = arith.constant 0 : index
    %c0_0 = arith.constant 0 : index
    %0 = vector.load %arg1[%c0, %c0_0] : memref<8x32xf32, #tpu.memory_space<vmem>>, vector<8x32xf32>
    %c0_1 = arith.constant 0 : index
    %c0_2 = arith.constant 0 : index
    %c0_3 = arith.constant 0 : index
    %1 = vector.load %arg2[%c0_1, %c0_2, %c0_3] : memref<1x8x8xf32, #tpu.memory_space<vmem>>, vector<1x8x8xf32>
    %2 = vector.shape_cast %1 : vector<1x8x8xf32> to vector<8x8xf32>
    %c0_4 = arith.constant 0 : index
    %c0_5 = arith.constant 0 : index
    %3 = vector.load %arg7[%c0_4, %c0_5] : memref<8x128xf32, #tpu.memory_space<vmem>>, vector<1x96xf32>
    %c0_6 = arith.constant 0 : index
    %c0_7 = arith.constant 0 : index
    %4 = vector.load %arg3[%c0_6, %c0_7] : memref<32x96xf32, #tpu.memory_space<vmem>>, vector<32x96xf32>
    %cst = arith.constant dense<0.000000e+00> : vector<8x96xf32>
    %5 = tpu.matmul %0, %4, %cst {dimension_numbers = #tpu.dot_dimension_numbers<[1], [0], [0], [1], [0, 0, 1, 1], [], []>} : vector<8x32xf32>, vector<32x96xf32>, vector<8x96xf32> -> vector<8x96xf32>
    %6 = vector.broadcast %3 : vector<1x96xf32> to vector<8x96xf32>
    %7 = arith.addf %5, %6 : vector<8x96xf32>
    %8 = vector.extract_strided_slice %7 {offsets = [0, 0], sizes = [8, 32], strides = [1, 1]} : vector<8x96xf32> to vector<8x32xf32>
    %9 = vector.extract_strided_slice %7 {offsets = [0, 32], sizes = [8, 32], strides = [1, 1]} : vector<8x96xf32> to vector<8x32xf32>
    %10 = vector.extract_strided_slice %7 {offsets = [0, 64], sizes = [8, 32], strides = [1, 1]} : vector<8x96xf32> to vector<8x32xf32>
    %11 = vector.extract_strided_slice %8 {offsets = [0, 0], sizes = [8, 8], strides = [1, 1]} : vector<8x32xf32> to vector<8x8xf32>
    %12 = vector.extract_strided_slice %9 {offsets = [0, 0], sizes = [8, 8], strides = [1, 1]} : vector<8x32xf32> to vector<8x8xf32>
    %13 = vector.extract_strided_slice %10 {offsets = [0, 0], sizes = [8, 8], strides = [1, 1]} : vector<8x32xf32> to vector<8x8xf32>
    %cst_8 = arith.constant dense<0.000000e+00> : vector<8x8xf32>
    %14 = tpu.matmul %11, %12, %cst_8 {dimension_numbers = #tpu.dot_dimension_numbers<[1], [1], [0], [0], [0, 0, 1, 0], [], []>} : vector<8x8xf32>, vector<8x8xf32>, vector<8x8xf32> -> vector<8x8xf32>
    %cst_9 = arith.constant 5.000000e-01 : f32
    %15 = vector.broadcast %cst_9 : f32 to vector<8x8xf32>
    %16 = arith.cmpf ogt, %2, %15 : vector<8x8xf32>
    %cst_10 = arith.constant -1.000000e+09 : f32
    %17 = vector.broadcast %cst_10 : f32 to vector<8x8xf32>
    %18 = arith.select %16, %17, %14 : vector<8x8xi1>, vector<8x8xf32>
    %cst_11 = arith.constant dense<0xFF800000> : vector<8xf32>
    %19 = vector.multi_reduction <maximumf>, %18, %cst_11 [1] : vector<8x8xf32> to vector<8xf32>
    %20 = vector.shape_cast %19 : vector<8xf32> to vector<8x1xf32>
    %21 = vector.broadcast %20 : vector<8x1xf32> to vector<8x8xf32>
    %22 = arith.subf %18, %21 : vector<8x8xf32>
    %23 = math.exp %22 : vector<8x8xf32>
    %cst_12 = arith.constant dense<0.000000e+00> : vector<8xf32>
    %24 = vector.multi_reduction <add>, %23, %cst_12 [1] : vector<8x8xf32> to vector<8xf32>
    %25 = vector.shape_cast %24 : vector<8xf32> to vector<8x1xf32>
    %26 = vector.broadcast %25 : vector<8x1xf32> to vector<8x8xf32>
    %27 = arith.divf %23, %26 : vector<8x8xf32>
    %cst_13 = arith.constant dense<0.000000e+00> : vector<8x8xf32>
    %28 = tpu.matmul %27, %13, %cst_13 {dimension_numbers = #tpu.dot_dimension_numbers<[1], [0], [0], [1], [0, 0, 1, 1], [], []>} : vector<8x8xf32>, vector<8x8xf32>, vector<8x8xf32> -> vector<8x8xf32>
    %29 = vector.extract_strided_slice %8 {offsets = [0, 8], sizes = [8, 8], strides = [1, 1]} : vector<8x32xf32> to vector<8x8xf32>
    %30 = vector.extract_strided_slice %9 {offsets = [0, 8], sizes = [8, 8], strides = [1, 1]} : vector<8x32xf32> to vector<8x8xf32>
    %31 = vector.extract_strided_slice %10 {offsets = [0, 8], sizes = [8, 8], strides = [1, 1]} : vector<8x32xf32> to vector<8x8xf32>
    %cst_14 = arith.constant dense<0.000000e+00> : vector<8x8xf32>
    %32 = tpu.matmul %29, %30, %cst_14 {dimension_numbers = #tpu.dot_dimension_numbers<[1], [1], [0], [0], [0, 0, 1, 0], [], []>} : vector<8x8xf32>, vector<8x8xf32>, vector<8x8xf32> -> vector<8x8xf32>
    %cst_15 = arith.constant 5.000000e-01 : f32
    %33 = vector.broadcast %cst_15 : f32 to vector<8x8xf32>
    %34 = arith.cmpf ogt, %2, %33 : vector<8x8xf32>
    %cst_16 = arith.constant -1.000000e+09 : f32
    %35 = vector.broadcast %cst_16 : f32 to vector<8x8xf32>
    %36 = arith.select %34, %35, %32 : vector<8x8xi1>, vector<8x8xf32>
    %cst_17 = arith.constant dense<0xFF800000> : vector<8xf32>
    %37 = vector.multi_reduction <maximumf>, %36, %cst_17 [1] : vector<8x8xf32> to vector<8xf32>
    %38 = vector.shape_cast %37 : vector<8xf32> to vector<8x1xf32>
    %39 = vector.broadcast %38 : vector<8x1xf32> to vector<8x8xf32>
    %40 = arith.subf %36, %39 : vector<8x8xf32>
    %41 = math.exp %40 : vector<8x8xf32>
    %cst_18 = arith.constant dense<0.000000e+00> : vector<8xf32>
    %42 = vector.multi_reduction <add>, %41, %cst_18 [1] : vector<8x8xf32> to vector<8xf32>
    %43 = vector.shape_cast %42 : vector<8xf32> to vector<8x1xf32>
    %44 = vector.broadcast %43 : vector<8x1xf32> to vector<8x8xf32>
    %45 = arith.divf %41, %44 : vector<8x8xf32>
    %cst_19 = arith.constant dense<0.000000e+00> : vector<8x8xf32>
    %46 = tpu.matmul %45, %31, %cst_19 {dimension_numbers = #tpu.dot_dimension_numbers<[1], [0], [0], [1], [0, 0, 1, 1], [], []>} : vector<8x8xf32>, vector<8x8xf32>, vector<8x8xf32> -> vector<8x8xf32>
    %47 = vector.extract_strided_slice %8 {offsets = [0, 16], sizes = [8, 8], strides = [1, 1]} : vector<8x32xf32> to vector<8x8xf32>
    %48 = vector.extract_strided_slice %9 {offsets = [0, 16], sizes = [8, 8], strides = [1, 1]} : vector<8x32xf32> to vector<8x8xf32>
    %49 = vector.extract_strided_slice %10 {offsets = [0, 16], sizes = [8, 8], strides = [1, 1]} : vector<8x32xf32> to vector<8x8xf32>
    %cst_20 = arith.constant dense<0.000000e+00> : vector<8x8xf32>
    %50 = tpu.matmul %47, %48, %cst_20 {dimension_numbers = #tpu.dot_dimension_numbers<[1], [1], [0], [0], [0, 0, 1, 0], [], []>} : vector<8x8xf32>, vector<8x8xf32>, vector<8x8xf32> -> vector<8x8xf32>
    %cst_21 = arith.constant 5.000000e-01 : f32
    %51 = vector.broadcast %cst_21 : f32 to vector<8x8xf32>
    %52 = arith.cmpf ogt, %2, %51 : vector<8x8xf32>
    %cst_22 = arith.constant -1.000000e+09 : f32
    %53 = vector.broadcast %cst_22 : f32 to vector<8x8xf32>
    %54 = arith.select %52, %53, %50 : vector<8x8xi1>, vector<8x8xf32>
    %cst_23 = arith.constant dense<0xFF800000> : vector<8xf32>
    %55 = vector.multi_reduction <maximumf>, %54, %cst_23 [1] : vector<8x8xf32> to vector<8xf32>
    %56 = vector.shape_cast %55 : vector<8xf32> to vector<8x1xf32>
    %57 = vector.broadcast %56 : vector<8x1xf32> to vector<8x8xf32>
    %58 = arith.subf %54, %57 : vector<8x8xf32>
    %59 = math.exp %58 : vector<8x8xf32>
    %cst_24 = arith.constant dense<0.000000e+00> : vector<8xf32>
    %60 = vector.multi_reduction <add>, %59, %cst_24 [1] : vector<8x8xf32> to vector<8xf32>
    %61 = vector.shape_cast %60 : vector<8xf32> to vector<8x1xf32>
    %62 = vector.broadcast %61 : vector<8x1xf32> to vector<8x8xf32>
    %63 = arith.divf %59, %62 : vector<8x8xf32>
    %cst_25 = arith.constant dense<0.000000e+00> : vector<8x8xf32>
    %64 = tpu.matmul %63, %49, %cst_25 {dimension_numbers = #tpu.dot_dimension_numbers<[1], [0], [0], [1], [0, 0, 1, 1], [], []>} : vector<8x8xf32>, vector<8x8xf32>, vector<8x8xf32> -> vector<8x8xf32>
    %65 = vector.extract_strided_slice %8 {offsets = [0, 24], sizes = [8, 8], strides = [1, 1]} : vector<8x32xf32> to vector<8x8xf32>
    %66 = vector.extract_strided_slice %9 {offsets = [0, 24], sizes = [8, 8], strides = [1, 1]} : vector<8x32xf32> to vector<8x8xf32>
    %67 = vector.extract_strided_slice %10 {offsets = [0, 24], sizes = [8, 8], strides = [1, 1]} : vector<8x32xf32> to vector<8x8xf32>
    %cst_26 = arith.constant dense<0.000000e+00> : vector<8x8xf32>
    %68 = tpu.matmul %65, %66, %cst_26 {dimension_numbers = #tpu.dot_dimension_numbers<[1], [1], [0], [0], [0, 0, 1, 0], [], []>} : vector<8x8xf32>, vector<8x8xf32>, vector<8x8xf32> -> vector<8x8xf32>
    %cst_27 = arith.constant 5.000000e-01 : f32
    %69 = vector.broadcast %cst_27 : f32 to vector<8x8xf32>
    %70 = arith.cmpf ogt, %2, %69 : vector<8x8xf32>
    %cst_28 = arith.constant -1.000000e+09 : f32
    %71 = vector.broadcast %cst_28 : f32 to vector<8x8xf32>
    %72 = arith.select %70, %71, %68 : vector<8x8xi1>, vector<8x8xf32>
    %cst_29 = arith.constant dense<0xFF800000> : vector<8xf32>
    %73 = vector.multi_reduction <maximumf>, %72, %cst_29 [1] : vector<8x8xf32> to vector<8xf32>
    %74 = vector.shape_cast %73 : vector<8xf32> to vector<8x1xf32>
    %75 = vector.broadcast %74 : vector<8x1xf32> to vector<8x8xf32>
    %76 = arith.subf %72, %75 : vector<8x8xf32>
    %77 = math.exp %76 : vector<8x8xf32>
    %cst_30 = arith.constant dense<0.000000e+00> : vector<8xf32>
    %78 = vector.multi_reduction <add>, %77, %cst_30 [1] : vector<8x8xf32> to vector<8xf32>
    %79 = vector.shape_cast %78 : vector<8xf32> to vector<8x1xf32>
    %80 = vector.broadcast %79 : vector<8x1xf32> to vector<8x8xf32>
    %81 = arith.divf %77, %80 : vector<8x8xf32>
    %cst_31 = arith.constant dense<0.000000e+00> : vector<8x8xf32>
    %82 = tpu.matmul %81, %67, %cst_31 {dimension_numbers = #tpu.dot_dimension_numbers<[1], [0], [0], [1], [0, 0, 1, 1], [], []>} : vector<8x8xf32>, vector<8x8xf32>, vector<8x8xf32> -> vector<8x8xf32>
    %83 = tpu.concatenate %27, %45, %63, %81 in 0 : vector<8x8xf32>, vector<8x8xf32>, vector<8x8xf32>, vector<8x8xf32> -> vector<32x8xf32>
    %c0_32 = arith.constant 0 : index
    %c0_33 = arith.constant 0 : index
    %84 = vector.load %arg9[%c0_32, %c0_33] : memref<32x8xf32, #tpu.memory_space<vmem>>, vector<32x8xf32>
    tpu.vector_store %arg9[%c0_32, %c0_33], %83 {strides = array<i32>} : memref<32x8xf32, #tpu.memory_space<vmem>>, vector<32x8xf32>,
    %85 = tpu.concatenate %28, %46, %64, %82 in 1 : vector<8x8xf32>, vector<8x8xf32>, vector<8x8xf32>, vector<8x8xf32> -> vector<8x32xf32>
    %c1 = arith.constant 1 : index
    %c0_34 = arith.constant 0 : index
    %86 = vector.load %arg7[%c1, %c0_34] : memref<8x128xf32, #tpu.memory_space<vmem>>, vector<1x32xf32>
    %c0_35 = arith.constant 0 : index
    %c0_36 = arith.constant 0 : index
    %87 = vector.load %arg4[%c0_35, %c0_36] : memref<32x32xf32, #tpu.memory_space<vmem>>, vector<32x32xf32>
    %cst_37 = arith.constant dense<0.000000e+00> : vector<8x32xf32>
    %88 = tpu.matmul %85, %87, %cst_37 {dimension_numbers = #tpu.dot_dimension_numbers<[1], [0], [0], [1], [0, 0, 1, 1], [], []>} : vector<8x32xf32>, vector<32x32xf32>, vector<8x32xf32> -> vector<8x32xf32>
    %89 = vector.broadcast %86 : vector<1x32xf32> to vector<8x32xf32>
    %90 = arith.addf %88, %89 : vector<8x32xf32>
    %c2 = arith.constant 2 : index
    %c0_38 = arith.constant 0 : index
    %91 = vector.load %arg7[%c2, %c0_38] : memref<8x128xf32, #tpu.memory_space<vmem>>, vector<1x32xf32>
    %c3 = arith.constant 3 : index
    %c0_39 = arith.constant 0 : index
    %92 = vector.load %arg7[%c3, %c0_39] : memref<8x128xf32, #tpu.memory_space<vmem>>, vector<1x32xf32>
    %93 = arith.addf %0, %90 : vector<8x32xf32>
    %cst_40 = arith.constant dense<0.000000e+00> : vector<8xf32>
    %94 = vector.multi_reduction <add>, %93, %cst_40 [1] : vector<8x32xf32> to vector<8xf32>
    %95 = vector.shape_cast %94 : vector<8xf32> to vector<8x1xf32>
    %cst_41 = arith.constant 3.200000e+01 : f32
    %96 = vector.broadcast %cst_41 : f32 to vector<8x1xf32>
    %97 = arith.divf %95, %96 : vector<8x1xf32>
    %98 = vector.broadcast %97 : vector<8x1xf32> to vector<8x32xf32>
    %99 = arith.subf %93, %98 : vector<8x32xf32>
    %100 = arith.mulf %99, %99 : vector<8x32xf32>
    %cst_42 = arith.constant dense<0.000000e+00> : vector<8xf32>
    %101 = vector.multi_reduction <add>, %100, %cst_42 [1] : vector<8x32xf32> to vector<8xf32>
    %102 = vector.shape_cast %101 : vector<8xf32> to vector<8x1xf32>
    %cst_43 = arith.constant 3.200000e+01 : f32
    %103 = vector.broadcast %cst_43 : f32 to vector<8x1xf32>
    %104 = arith.divf %102, %103 : vector<8x1xf32>
    %105 = vector.broadcast %97 : vector<8x1xf32> to vector<8x32xf32>
    %106 = arith.subf %93, %105 : vector<8x32xf32>
    %cst_44 = arith.constant 9.99999996E-13 : f32
    %107 = vector.broadcast %cst_44 : f32 to vector<8x1xf32>
    %108 = arith.addf %104, %107 : vector<8x1xf32>
    %109 = math.rsqrt %108 : vector<8x1xf32>
    %110 = vector.broadcast %109 : vector<8x1xf32> to vector<8x32xf32>
    %111 = arith.mulf %106, %110 : vector<8x32xf32>
    %112 = vector.broadcast %91 : vector<1x32xf32> to vector<8x32xf32>
    %113 = arith.mulf %111, %112 : vector<8x32xf32>
    %114 = vector.broadcast %92 : vector<1x32xf32> to vector<8x32xf32>
    %115 = arith.addf %113, %114 : vector<8x32xf32>
    %c4 = arith.constant 4 : index
    %c0_45 = arith.constant 0 : index
    %116 = vector.load %arg7[%c4, %c0_45] : memref<8x128xf32, #tpu.memory_space<vmem>>, vector<1x64xf32>
    %c5 = arith.constant 5 : index
    %c0_46 = arith.constant 0 : index
    %117 = vector.load %arg7[%c5, %c0_46] : memref<8x128xf32, #tpu.memory_space<vmem>>, vector<1x32xf32>
    %c0_47 = arith.constant 0 : index
    %c0_48 = arith.constant 0 : index
    %118 = vector.load %arg5[%c0_47, %c0_48] : memref<32x64xf32, #tpu.memory_space<vmem>>, vector<32x64xf32>
    %cst_49 = arith.constant dense<0.000000e+00> : vector<8x64xf32>
    %119 = tpu.matmul %115, %118, %cst_49 {dimension_numbers = #tpu.dot_dimension_numbers<[1], [0], [0], [1], [0, 0, 1, 1], [], []>} : vector<8x32xf32>, vector<32x64xf32>, vector<8x64xf32> -> vector<8x64xf32>
    %120 = vector.broadcast %116 : vector<1x64xf32> to vector<8x64xf32>
    %121 = arith.addf %119, %120 : vector<8x64xf32>
    %cst_50 = arith.constant 5.000000e-01 : f32
    %122 = vector.broadcast %cst_50 : f32 to vector<8x64xf32>
    %123 = arith.mulf %122, %121 : vector<8x64xf32>
    %cst_51 = arith.constant 0.707106769 : f32
    %124 = vector.broadcast %cst_51 : f32 to vector<8x64xf32>
    %125 = arith.mulf %121, %124 : vector<8x64xf32>
    %126 = math.erf %125 : vector<8x64xf32>
    %cst_52 = arith.constant 1.000000e+00 : f32
    %127 = vector.broadcast %cst_52 : f32 to vector<8x64xf32>
    %128 = arith.addf %127, %126 : vector<8x64xf32>
    %129 = arith.mulf %123, %128 : vector<8x64xf32>
    %c0_53 = arith.constant 0 : index
    %c0_54 = arith.constant 0 : index
    %130 = vector.load %arg6[%c0_53, %c0_54] : memref<64x32xf32, #tpu.memory_space<vmem>>, vector<64x32xf32>
    %cst_55 = arith.constant dense<0.000000e+00> : vector<8x32xf32>
    %131 = tpu.matmul %129, %130, %cst_55 {dimension_numbers = #tpu.dot_dimension_numbers<[1], [0], [0], [1], [0, 0, 1, 1], [], []>} : vector<8x64xf32>, vector<64x32xf32>, vector<8x32xf32> -> vector<8x32xf32>
    %132 = vector.broadcast %117 : vector<1x32xf32> to vector<8x32xf32>
    %133 = arith.addf %131, %132 : vector<8x32xf32>
    %c6 = arith.constant 6 : index
    %c0_56 = arith.constant 0 : index
    %134 = vector.load %arg7[%c6, %c0_56] : memref<8x128xf32, #tpu.memory_space<vmem>>, vector<1x32xf32>
    %c7 = arith.constant 7 : index
    %c0_57 = arith.constant 0 : index
    %135 = vector.load %arg7[%c7, %c0_57] : memref<8x128xf32, #tpu.memory_space<vmem>>, vector<1x32xf32>
    %136 = arith.addf %115, %133 : vector<8x32xf32>
    %cst_58 = arith.constant dense<0.000000e+00> : vector<8xf32>
    %137 = vector.multi_reduction <add>, %136, %cst_58 [1] : vector<8x32xf32> to vector<8xf32>
    %138 = vector.shape_cast %137 : vector<8xf32> to vector<8x1xf32>
    %cst_59 = arith.constant 3.200000e+01 : f32
    %139 = vector.broadcast %cst_59 : f32 to vector<8x1xf32>
    %140 = arith.divf %138, %139 : vector<8x1xf32>
    %141 = vector.broadcast %140 : vector<8x1xf32> to vector<8x32xf32>
    %142 = arith.subf %136, %141 : vector<8x32xf32>
    %143 = arith.mulf %142, %142 : vector<8x32xf32>
    %cst_60 = arith.constant dense<0.000000e+00> : vector<8xf32>
    %144 = vector.multi_reduction <add>, %143, %cst_60 [1] : vector<8x32xf32> to vector<8xf32>
    %145 = vector.shape_cast %144 : vector<8xf32> to vector<8x1xf32>
    %cst_61 = arith.constant 3.200000e+01 : f32
    %146 = vector.broadcast %cst_61 : f32 to vector<8x1xf32>
    %147 = arith.divf %145, %146 : vector<8x1xf32>
    %148 = vector.broadcast %140 : vector<8x1xf32> to vector<8x32xf32>
    %149 = arith.subf %136, %148 : vector<8x32xf32>
    %cst_62 = arith.constant 9.99999996E-13 : f32
    %150 = vector.broadcast %cst_62 : f32 to vector<8x1xf32>
    %151 = arith.addf %147, %150 : vector<8x1xf32>
    %152 = math.rsqrt %151 : vector<8x1xf32>
    %153 = vector.broadcast %152 : vector<8x1xf32> to vector<8x32xf32>
    %154 = arith.mulf %149, %153 : vector<8x32xf32>
    %155 = vector.broadcast %134 : vector<1x32xf32> to vector<8x32xf32>
    %156 = arith.mulf %154, %155 : vector<8x32xf32>
    %157 = vector.broadcast %135 : vector<1x32xf32> to vector<8x32xf32>
    %158 = arith.addf %156, %157 : vector<8x32xf32>
    %c0_63 = arith.constant 0 : index
    %c0_64 = arith.constant 0 : index
    %159 = vector.load %arg8[%c0_63, %c0_64] : memref<8x32xf32, #tpu.memory_space<vmem>>, vector<8x32xf32>
    tpu.vector_store %arg8[%c0_63, %c0_64], %158 {strides = array<i32>} : memref<8x32xf32, #tpu.memory_space<vmem>>, vector<8x32xf32>,
    return
  }
  func.func @transform_0(%arg0: i32) -> (i32, i32) {
    %c0_i32 = arith.constant 0 : i32
    %c0_i32_0 = arith.constant 0 : i32
    return %arg0, %c0_i32 : i32, i32
  }
  func.func @transform_1(%arg0: i32) -> (i32, i32, i32) {
    %c0_i32 = arith.constant 0 : i32
    %c0_i32_0 = arith.constant 0 : i32
    %c0_i32_1 = arith.constant 0 : i32
    return %arg0, %c0_i32, %c0_i32_0 : i32, i32, i32
  }
  func.func @transform_2(%arg0: i32) -> (i32, i32) {
    %c0_i32 = arith.constant 0 : i32
    %c0_i32_0 = arith.constant 0 : i32
    %c0_i32_1 = arith.constant 0 : i32
    return %c0_i32, %c0_i32_0 : i32, i32
  }
  func.func @transform_3(%arg0: i32) -> (i32, i32) {
    %c0_i32 = arith.constant 0 : i32
    %c0_i32_0 = arith.constant 0 : i32
    %c0_i32_1 = arith.constant 0 : i32
    return %c0_i32, %c0_i32_0 : i32, i32
  }
  func.func @transform_4(%arg0: i32) -> (i32, i32) {
    %c0_i32 = arith.constant 0 : i32
    %c0_i32_0 = arith.constant 0 : i32
    %c0_i32_1 = arith.constant 0 : i32
    return %c0_i32, %c0_i32_0 : i32, i32
  }
  func.func @transform_5(%arg0: i32) -> (i32, i32) {
    %c0_i32 = arith.constant 0 : i32
    %c0_i32_0 = arith.constant 0 : i32
    %c0_i32_1 = arith.constant 0 : i32
    return %c0_i32, %c0_i32_0 : i32, i32
  }
  func.func @transform_6(%arg0: i32) -> (i32, i32) {
    %c0_i32 = arith.constant 0 : i32
    %c0_i32_0 = arith.constant 0 : i32
    %c0_i32_1 = arith.constant 0 : i32
    return %c0_i32, %c0_i32_0 : i32, i32
  }
  func.func @transform_7(%arg0: i32) -> (i32, i32) {
    %c0_i32 = arith.constant 0 : i32
    %c0_i32_0 = arith.constant 0 : i32
    return %arg0, %c0_i32 : i32, i32
  }
  func.func @transform_8(%arg0: i32) -> (i32, i32) {
    %c0_i32 = arith.constant 0 : i32
    %c0_i32_0 = arith.constant 0 : i32
    return %arg0, %c0_i32 : i32, i32
  }
}

</mosaic_0001>

<bundles_post_ra>
// kernel: tpu_custom_call.1
= control target key start
LH: loop header
LB: loop body
LE: loop exit
PB: predicated region body
PF: predicated region fallthrough
CT: control target
= control target key end

     0   :  { %s2442_s0 = inlined_call_operand.hbm [shape: f32[16,32], index: 0, kind: input, shape index: {}]   ;;  %s2443_s1 = inlined_call_operand.hbm [shape: f32[2,8,8], index: 1, kind: input, shape index: {}]   ;;  %s2444_s2 = inlined_call_operand.vmem [shape: f32[32,96], index: 2, kind: input, shape index: {}]   ;;  %s2445_s3 = inlined_call_operand.vmem [shape: f32[32,32], index: 3, kind: input, shape index: {}]   ;;  %s2446_s4 = inlined_call_operand.vmem [shape: f32[32,64], index: 4, kind: input, shape index: {}]   ;;  %s2447_s5 = inlined_call_operand.vmem [shape: f32[64,32], index: 5, kind: input, shape index: {}]   ;;  %s2448_s6 = inlined_call_operand.vmem [shape: f32[8,128], index: 6, kind: input, shape index: {}]   ;;  %s2449_s7 = inlined_call_operand.hbm [shape: f32[16,32], index: 7, kind: output, shape index: {0}]   ;;  %s2450_s8 = inlined_call_operand.vmem [shape: f32[64,8], index: 8, kind: output, shape index: {1}]  }
   0x1   :  { %2455 = sst [smem:[#allocation12_spill]] %s2442_s0 }
   0x2   :  { %14 = vsyncpa [#allocation3], 0 }
   0x3   :  { %16 = vsyncpa [#allocation3 + $0x1], 0 }
   0x4   :  { %17 = vsyncpa [#allocation6], 0 }
   0x5   :  { %19 = vsyncpa [#allocation6 + $0x1], 0 }
   0x6   :  { %20 = vsyncpa [#allocation4], 0 }
   0x7   :  { %22 = vsyncpa [#allocation4 + $0x1], 0  ;;  %s2046_s27 = smov 0   ;;  %s2048_s28 = smov 0  }
   0x8   :  { %s2050_s29 = smov 0   ;;  %s2052_s30 = smov 0  }
   0x9 LB: > { %s2067_s9 = sadd.s32 4294967295, %s1980_s30   ;;  %s1594_s10 = sadd.s32 4294967294, %s1980_s30   ;;  %s1980_s30 = sphi %s2052_s30, %s2477_s30   ;;  %s1976_s29 = sphi %s2050_s29, %s2476_s29   ;;  %s1972_s28 = sphi %s2048_s28, %s2475_s28   ;;  %s1968_s27 = sphi %s2046_s27, %s2474_s27  }
   0xa   : > { %s2071_s11 = sadd.s32 1, %s1980_s30   ;;  %s35_s12 = sadd.s32 1, %s1976_s29 }
   0xb   : > { %s32_s13 = ssub.s32 %s1980_s30, %s2071_s11  ;;  %p42_p0 = scmp.ne.s32.totalorder %s1976_s29, %s1972_s28 }
   0xc   : > { %p33_p1 = scmp.eq.s32.totalorder %s32_s13, 0  ;;  %p43_p2 = scmp.eq.s32.totalorder %s1980_s30, 0 }
   0xd   : > { %p48_p3 = scmp.ne.s32.totalorder %s1972_s28, %s1968_s27  ;;  %p49_p4 = scmp.eq.s32.totalorder %s2067_s9, 0 }
   0xe   : > { %s2083_s14 = scalar_select %p33_p1, %s1976_s29, %s35_s12  }
   0xf   : > { %p2085_p5 = por %p43_p2, %p42_p0  ;;  %p2089_p6 = por %p49_p4, %p48_p3 }
  0x10   : > { %2456 = sst [smem:[#allocation11_spill]] %s2083_s14  ;;  %p203_p7 = scmp.eq.s32.totalorder %s2067_s9, 1 }
  0x11   : > { %s2458_s16 = scalar_select %p2089_p6, 1, 0 }
  0x12   : > { %p209_p8 = scmp.eq.s32.totalorder %s1594_s10, 1  ;;  %p1784_p10 = scmp.lt.s32.totalorder %s1980_s30, 2 }
  0x13   : > { %p2096_p11 = por %p203_p7, %p42_p0  ;;  %s2105_s19 = sand.u32 1, %s1976_s29  }
  0x14   : > { %p2100_p12 = por %p209_p8, %p48_p3  ;;  %s2452_s20 = sshll.u32 %s1980_s30, 7 }
  0x15   : > { %s2459_s17 = scalar_select %p2096_p11, 1, 0 }
  0x16   : > { %s2460_s18 = scalar_select %p2100_p12, 1, 0 }
  0x17   : > { %s2451_s21 = sshll.u32 %s2105_s19, 3  ;;  %s2461_s0 = sld [smem:[#allocation12_spill]] }
  0x18   : > { %s274_s25 = scalar_lea.vmem [#allocation2], %s2451_s21  ;;  %p2120_p13 = pnand %p1784_p10, %p2085_p5 }
  0x19   : > { %s281_s26 = sshll.u32 %s274_s25, 4  ;;  %s271_s12 = scalar_lea.sflag [#allocation3], %s2105_s19  ;;  %s2124_s26 = int_to_ptr.vmem [resolvable:$true] %s281_s26 }
  0x1a   : > { %p1858_p3 = pneg %p2120_p13 }
  0x1d   : > { %s2114_s24 = scalar_lea.hbm %s2461_s0, %s2452_s20  ;;  %s1861_s23 = scalar_lea.hbm %s2461_s0, 256 }
  0x1e   : > { %s1856_s13 = scalar_lea.hbm %s2114_s24, 128  ;;  %p1862_p5 = scmp.lt.s32.totalorder %s2114_s24, %s2461_s0 }
  0x1f   : > { %p1857_p2 = scmp.ne.s32.totalorder %s2114_s24, %s1856_s13  ;;  %p1863_p8 = scmp.lt.s32.totalorder %s1861_s23, %s1856_s13 }
  0x21   : > { %p1859_p4 = pnand %p1858_p3, %p1857_p2  ;;  %p1864_p10 = por %p1863_p8, %p1862_p5 }
  0x23   : > { %p1860_p7 = pneg %p1859_p4 }
  0x25   : > { %p1865_p9 = pnand %p1864_p10, %p1860_p7 }
  0x27   : > { %1868 = shalt.err (!%p1865_p9)
}
  0x28   : > { %s1869_s20 = scalar_lea.vmem %s2124_s26, 128  ;;  %s1982_s15 = smov [#allocation2]  }
  0x29   : > { %p1870_p0 = scmp.ne.s32.totalorder %s2124_s26, %s1869_s20  ;;  %s1874_s22 = sshll.u32 %s1982_s15, 4  ;;  %s1875_s22 = int_to_ptr.vmem [resolvable:$false] %s1874_s22 }
  0x2a   : > { %s1876_s14 = scalar_lea.vmem %s1875_s22, 256  ;;  %p1877_p1 = scmp.lt.s32.totalorder %s2124_s26, %s1875_s22 }
  0x2b   : > { %p1872_p2 = pnand %p1870_p0, %p1858_p3  ;;  %p1878_p12 = scmp.lt.s32.totalorder %s1876_s14, %s1869_s20 }
  0x2d   : > { %p1873_p4 = pneg %p1872_p2  ;;  %p1879_p11 = por %p1878_p12, %p1877_p1 }
  0x2f   : > { %p1880_p5 = pnand %p1879_p11, %p1873_p4 }
  0x31   : > { %1883 = shalt.err (!%p1880_p5)
}
  0x32   : > { %1776 = dma.hbm_to_vmem [thread:$0]  (!%p2120_p13), %s2114_s24, 128, %s2124_s26, %s271_s12  }
  0x33   : > { %p2463_p9 = scmp.lt.s32.totalorder %s1980_s30, 3  ;;  %p2464_p0 = scmp.ge.s32.totalorder %s1980_s30, 1 }
  0x34   : > { %s2466_s14 = sshll.u32 %s1980_s30, 7  ;;  %s2467_s25 = sshll.u32 %s2105_s19, 3 }
  0x35   : > { %p2157_p7 = pnand %p2464_p0, %p2463_p9  ;;  %s2166_s23 = scalar_lea.hbm %s2443_s1, %s2466_s14 }
  0x36   : > { %s292_s15 = scalar_lea.vmem [#allocation5], %s2467_s25  ;;  %s289_s24 = scalar_lea.sflag [#allocation6], %s2105_s19 }
  0x37   : > { %s2465_s21 = scalar_select %p2157_p7, 1, 0 }
  0x38   : > { %s299_s22 = sshll.u32 %s292_s15, 4  ;;  %s1884_s26 = scalar_lea.hbm %s2166_s23, 128  ;;  %s300_s22 = int_to_ptr.vmem [resolvable:$true] %s299_s22 }
  0x39   : > { %p1885_p11 = scmp.ne.s32.totalorder %s2166_s23, %s1884_s26  ;;  %s1889_s20 = scalar_lea.hbm %s2443_s1, 256 }
  0x3a   : > { %p1890_p8 = scmp.lt.s32.totalorder %s2166_s23, %s2443_s1  ;;  %p1891_p10 = scmp.lt.s32.totalorder %s1889_s20, %s1884_s26 }
  0x3b   : > { %p1887_p12 = pnand %p1885_p11, %p1858_p3 }
  0x3c   : > { %p1892_p2 = por %p1891_p10, %p1890_p8 }
  0x3d   : > { %p1888_p1 = pneg %p1887_p12 }
  0x3f   : > { %p1893_p4 = pnand %p1892_p2, %p1888_p1 }
  0x41   : > { %1896 = shalt.err (!%p1893_p4)
}
  0x42   : > { %s1897_s25 = scalar_lea.vmem %s300_s22, 128  ;;  %s1983_s19 = smov [#allocation5]  }
  0x43   : > { %p1898_p5 = scmp.ne.s32.totalorder %s300_s22, %s1897_s25  ;;  %s1902_s15 = sshll.u32 %s1983_s19, 4  ;;  %s1903_s15 = int_to_ptr.vmem [resolvable:$false] %s1902_s15 }
  0x44   : > { %s1904_s0 = scalar_lea.vmem %s1903_s15, 256  ;;  %p1905_p11 = scmp.lt.s32.totalorder %s300_s22, %s1903_s15 }
  0x45   : > { %p1900_p9 = pnand %p1898_p5, %p1858_p3  ;;  %p1906_p12 = scmp.lt.s32.totalorder %s1904_s0, %s1897_s25 }
  0x47   : > { %p1901_p0 = pneg %p1900_p9  ;;  %p1907_p6 = por %p1906_p12, %p1905_p11 }
  0x49   : > { %p1908_p7 = pnand %p1907_p6, %p1901_p0 }
  0x4b   : > { %1911 = shalt.err (!%p1908_p7)
}
  0x4c   : > { %1779 = dma.hbm_to_vmem [thread:$0]  (!%p2120_p13), %s2166_s23, 128, %s300_s22, %s289_s24  }
  0x4d   : > { %p2468_p1 = scmp.ne.s32.totalorder %s2465_s21, 0 }
  0x4e   : > { %s2192_s26 = sand.u32 (!%p2468_p1), 1, %s1972_s28   ;;  %p2469_p6 = scmp.ne.s32.totalorder (!%p2468_p1), %s2458_s16, 0 }
  0x4f   : > { %308 = sbr.rel (%p2468_p1) target bundleno = 2520 (0x9d8), region = 48  ;;  %s2195_s12 = sshll.u32 (!%p2468_p1), %s2192_s26, 3 }
  0x50   : > { %s311_s20 = scalar_lea.sflag (!%p2468_p1), [#allocation3], %s2192_s26  ;;  %s314_s14 = scalar_lea.vmem (!%p2468_p1), [#allocation2], %s2195_s12 }
  0x54   : > { %1955 = dma.done.wait (%p2469_p6), %s311_s20, 128  }
  0x55   : > { %1957 = vsyncadd (%p2469_p6), %s311_s20, 4294967168  ;;  %s320_s10 = scalar_lea.sflag [#allocation6], %s2192_s26  ;;  %s323_s21 = scalar_lea.vmem [#allocation5], %s2195_s12 }
  0x56   : > { %1959 = dma.done.wait (%p2469_p6), %s320_s10, 128  }
  0x57   : > { %1961 = vsyncadd (%p2469_p6), %s320_s10, 4294967168  ;;  %v1984_v0 = vmov 0.0   ;;  %vm1985_vm0 = vmmov 0   ;;  %v378_v1 = vld [vmem:[%s2444_s2 + $0x18] sm:$0xff]  ;;  %v377_v2 = vld [vmem:[%s2444_s2 + $0x10] sm:$0xff]  ;;  %vm383_vm1 = vcmask 261120  }
  0x58   : > { %1675 = vmatprep.subr.mxu1 %v1984_v0  ;;  %1683 = vmatprep.mubr.msk.f32.mxu1 %vm1985_vm0, %v1984_v0  ;;  %v376_v3 = vld [vmem:[%s2444_s2 + $0x8] sm:$0xff]  ;;  %v375_v4 = vld [vmem:[%s2444_s2] sm:$0xff]  ;;  %s1987_s10 = smov 96   ;;  %s1988_s23 = smov 80   ;;  %vm460_vm2 = vcmask 64512   ;;  %v373_v17 = vld [vmem:[%s323_s21] sm:$0xff] }
  0x59   : > { %1696 = vmatprep.subr.mxu0 %v1984_v0  ;;  %1698 = vmatprep.mubr.msk.f32.mxu0 %vm1985_vm0, %v1984_v0  ;;  %v2229_v5 = vld [vmem:[%s314_s14] sm:$0xff]  ;;  %s1986_s14 = smov 120   ;;  %s1989_s22 = smov 88   ;;  %vm535_vm3 = vcmp.gt.f32.partialorder %v373_v17, 0.5  ;;  %vm1139_vm4 = vcmask 130048   ;;  %vm1141_vm5 = vcmask 195584  }
  0x5a   : > { %1676 = vmatpush3.msra.mxu1 %v378_v1  ;;  %v1607_v6 = vld [vmem:[%s2448_s6] ss:$0 sm:$0xff]  ;;  %s1990_s24 = smov 72   ;;  %s1991_s13 = smov 112   ;;  %vm1352_vm6 = vcmask 523264  }
  0x5b   : > { %1677 = vmatprep.subr.mxu1 %v1984_v0  ;;  %s1992_s16 = smov 104   ;;  %s1993_s21 = smov 56  }
  0x5c   : > { %1678 = vmatpush3.msra.mxu1 %v377_v2  ;;  %s1994_s25 = smov 64   ;;  %s1995_s19 = smov 48  }
  0x5d   : > { %1679 = vmatprep.subr.mxu1 %v1984_v0  ;;  %s1996_s15 = smov 40   ;;  %s1605_s0 = sshll.u32 %s2067_s9, 2 }
  0x5e   : > { %1680 = vmatpush3.msra.mxu1 %v376_v3  ;;  %p367_p13 = scmp.lt.s32.totalorder %s1605_s0, 7  ;;  %p2470_p7 = scmp.ne.s32.totalorder %s2459_s17, 0 }
  0x5f   : > { %1681 = vmatprep.subr.mxu1 %v1984_v0 }
  0x60   : > { %1682 = vmatpush3.msra.mxu1 %v375_v4  ;;  %s2479_s0 = smov (!%p367_p13, %s1605_s0), 7 }
  0x61   : > { %1684 = vmatmul.mubr.msk.f32.vlgmr.msra.gmra.mxu1 %vm383_vm1, %v2229_v5  ;;  %1686 = vmatprep.subr.mxu1 %v1984_v0  ;;  %s1606_s20 = sshll.u32 %s2479_s0, 3 }
  0x62   : > { %1688 = vmatprep.mubr.msk.f32.mxu1 %vm1985_vm0, %v1984_v0 }
 0x121   : > { %v453_v7 = vpop.f32.mrf.mxu1 }
 0x122   : > { %v2240_v8 = vadd.f32 %v1607_v6, %v453_v7 }
 0x123   : > { %v1685_v9 = vpop.f32.mrf.mxu1 }
 0x124   : > { %624 = vrot.lane.b32.xlu1 %v2240_v8, %s1986_s14  ;;  %458 = vrot.lane.b32.xlu0 %v2240_v8, %s1987_s10  ;;  %s1999_s14 = smov 24   ;;  %s358_s10 = scalar_lea.vmem [#allocation7], %s2195_s12 }
 0x128   : > { %792 = vrot.lane.b32.xlu1 %v2240_v8, %s1988_s23  ;;  %626 = vrot.lane.b32.xlu0 %v2240_v8, %s1989_s22  ;;  %s370_s23 = scalar_lea.vmem %s2450_s8, %s1606_s20  ;;  %s1998_s20 = smov 16  }
 0x12c   : > { %958 = vrot.lane.b32.xlu1 %v2240_v8, %s1990_s24  ;;  %790 = vrot.lane.b32.xlu0 %v2240_v8, %s1991_s13  ;;  %s1997_s13 = smov 8  }
 0x130   : > { %956 = vrot.lane.b32.xlu0 %v2240_v8, %s1992_s16  ;;  %s1454_s16 = scalar_lea.sflag [#allocation4], %s2192_s26 }
 0x196   : > { %v625_v10 = vpop.permute.xlu1 %624  ;;  %v459_v11 = vpop.permute.xlu0 %458 }
 0x197   : > { %1687 = vmatpush3.xpose.msk.msra.mxu1 %vm460_vm2, %v459_v11 }
 0x198   : > { %1691 = vmatprep.subr.mxu1 %v1984_v0 }
 0x19a   : > { %1689 = vmatmul.mubr.msk.f32.vlgmr.msra.gmra.mxu1 %vm460_vm2, %v2240_v8  ;;  %v627_v12 = vpop.permute.xlu0 %626  ;;  %v793_v13 = vpop.permute.xlu1 %792 }
 0x19b   : > { %1697 = vmatpush3.xpose.msk.msra.mxu0 %vm460_vm2, %v627_v12  ;;  %1693 = vmatprep.mubr.msk.f32.mxu1 %vm1985_vm0, %v1984_v0 }
 0x19c   : > { %1706 = vmatprep.subr.mxu0 %v1984_v0 }
 0x19e   : > { %1699 = vmatmul.mubr.msk.f32.vlgmr.msra.gmra.mxu0 %vm460_vm2, %v625_v10  ;;  %v791_v14 = vpop.permute.xlu0 %790  ;;  %v959_v15 = vpop.permute.xlu1 %958 }
 0x19f   : > { %1707 = vmatpush3.xpose.msk.msra.mxu0 %vm460_vm2, %v793_v13  ;;  %1708 = vmatprep.mubr.msk.f32.mxu0 %vm1985_vm0, %v1984_v0  ;;  %v1146_v13 = vld [vmem:[%s2445_s3 + $0x10] sm:$0xff] }
 0x1a0   : > { %1716 = vmatprep.subr.mxu0 %v1984_v0 }
 0x1a2   : > { %1709 = vmatmul.mubr.msk.f32.vlgmr.msra.gmra.mxu0 %vm460_vm2, %v791_v14  ;;  %v957_v16 = vpop.permute.xlu0 %956  ;;  %v1145_v14 = vld [vmem:[%s2445_s3 + $0x8] sm:$0xff] }
 0x1a3   : > { %1717 = vmatpush3.xpose.msk.msra.mxu0 %vm460_vm2, %v959_v15  ;;  %1718 = vmatprep.mubr.msk.f32.mxu0 %vm1985_vm0, %v1984_v0  ;;  %v1144_v15 = vld [vmem:[%s2445_s3] sm:$0xff] }
 0x1a4   : > { %1726 = vmatprep.subr.mxu0 %v1984_v0 }
 0x1a6   : > { %1719 = vmatmul.mubr.msk.f32.vlgmr.msra.gmra.mxu0 %vm460_vm2, %v957_v16 }
 0x1a7   : > { %1734 = vmatprep.mubr.msk.f32.mxu0 %vm1985_vm0, %v1984_v0 }
 0x25a   : > { %v531_v18 = vpop.f32.mrf.mxu1 }
 0x25b   : > { %v536_v19 = vsel %vm535_vm3, -1e+09, %v531_v18 }
 0x25c   : > { %v1690_v20 = vpop.f32.mrf.mxu1  ;;  %v537_v21 = vsel %vm460_vm2, %v536_v19, -inf }
 0x25d   : > { %538 = vmax.xlane.f32.xlu1 %v537_v21 }
 0x25e   : > { %v698_v22 = vpop.f32.mrf.mxu0 }
 0x25f   : > { %v702_v23 = vsel %vm535_vm3, -1e+09, %v698_v22 }
 0x260   : > { %v1700_v24 = vpop.f32.mrf.mxu0  ;;  %v703_v25 = vsel %vm460_vm2, %v702_v23, -inf }
 0x261   : > { %704 = vmax.xlane.f32.xlu0 %v703_v25 }
 0x262   : > { %v864_v26 = vpop.f32.mrf.mxu0 }
 0x263   : > { %v868_v27 = vsel %vm535_vm3, -1e+09, %v864_v26  ;;  %v1621_v26 = vld [vmem:[%s2448_s6 + $0x1] ss:$0 sm:$0xff] }
 0x264   : > { %v1710_v28 = vpop.f32.mrf.mxu0  ;;  %v869_v29 = vsel %vm460_vm2, %v868_v27, -inf }
 0x265   : > { %870 = vmax.xlane.f32.xlu0 %v869_v29 }
 0x266   : > { %v1030_v30 = vpop.f32.mrf.mxu0 }
 0x267   : > { %v1034_v31 = vsel %vm535_vm3, -1e+09, %v1030_v30 }
 0x268   : > { %v1720_v32 = vpop.f32.mrf.mxu0  ;;  %v1035_v33 = vsel %vm460_vm2, %v1034_v31, -inf }
 0x269   : > { %1036 = vmax.xlane.f32.xlu1 %v1035_v33 }
 0x27a   : > { %714 = vrot.lane.b32.xlu1 %v2240_v8, %s1993_s21 }
 0x2e6   : > { %v539_v34 = vpop.xlane.xlu1 %538 }
 0x2e7   : > { %v540_v35 = vsub.f32 %v536_v19, %v539_v34 }
 0x2e9   : > { %v541_v36 = vmul.f32 1.442695, %v540_v35 }
 0x2ea   : > { %v705_v37 = vpop.xlane.xlu0 %704 }
 0x2eb   : > { %1834 = vpow2.f32 %v541_v36  ;;  %v706_v38 = vsub.f32 %v702_v23, %v705_v37  ;;  %v1257_v37 = vld [vmem:[%s2446_s4 + $0x18] sm:$0xff] }
 0x2ed   : > { %v707_v39 = vmul.f32 1.442695, %v706_v38  ;;  %v1256_v38 = vld [vmem:[%s2446_s4 + $0x10] sm:$0xff] }
 0x2ee   : > { %v871_v49 = vpop.xlane.xlu0 %870 }
 0x2ef   : > { %1836 = vpow2.f32 %v707_v39  ;;  %v872_v50 = vsub.f32 %v868_v27, %v871_v49  ;;  %v1254_v39 = vld [vmem:[%s2446_s4] sm:$0xff]  ;;  %v1347_v49 = vld [vmem:[%s2447_s5 + $0x38] sm:$0xff] }
 0x2f1   : > { %v873_v51 = vmul.f32 1.442695, %v872_v50  ;;  %v1346_v50 = vld [vmem:[%s2447_s5 + $0x30] sm:$0xff] }
 0x2f2   : > { %v1037_v40 = vpop.xlane.xlu1 %1036 }
 0x2f3   : > { %v1038_v41 = vsub.f32 %v1034_v31, %v1037_v40 }
 0x2f5   : > { %v1039_v42 = vmul.f32 1.442695, %v1038_v41 }
 0x2f6   : > { %v715_v54 = vpop.permute.xlu1 %714 }
 0x2f7   : > { %1838 = vpow2.f32 %v1039_v42 }
 0x2f8   : > { %v1835_v43 = vpop.eup %1834  ;;  %1840 = vpow2.f32 %v873_v51  ;;  %v1345_v51 = vld [vmem:[%s2447_s5 + $0x28] sm:$0xff] }
 0x2f9   : > { %v543_v44 = vsel %vm460_vm2, %v1835_v43, 0.0 }
 0x2fa   : > { %544 = vadd.xlane.f32.xlu0 %v543_v44  ;;  %v1623_v44 = vld [vmem:[%s2448_s6 + $0x2] ss:$0 sm:$0xff] }
 0x2fc   : > { %v1837_v45 = vpop.eup %1836 }
 0x2fd   : > { %v709_v46 = vsel %vm460_vm2, %v1837_v45, 0.0 }
 0x2fe   : > { %710 = vadd.xlane.f32.xlu1 %v709_v46  ;;  %v1624_v46 = vld [vmem:[%s2448_s6 + $0x3] ss:$0 sm:$0xff] }
 0x304   : > { %v1839_v47 = vpop.eup %1838 }
 0x305   : > { %v1041_v48 = vsel %vm460_vm2, %v1839_v47, 0.0  ;;  %v1841_v52 = vpop.eup %1840 }
 0x306   : > { %1042 = vadd.xlane.f32.xlu1 %v1041_v48  ;;  %v875_v53 = vsel %vm460_vm2, %v1841_v52, 0.0 }
 0x310   : > { %548 = vrot.lane.b32.xlu0 %v2240_v8, %s1994_s25  ;;  %s2000_s25 = smov [#allocation7]  }
 0x317   : > { %880 = vrot.lane.b32.xlu1 %v2240_v8, %s1995_s19  ;;  %s1916_s19 = sshll.u32 %s2000_s25, 4  ;;  %s1917_s19 = int_to_ptr.vmem [resolvable:$false] %s1916_s19 }
 0x32f   : > { %876 = vadd.xlane.f32.xlu0 %v875_v53  ;;  %v1343_v53 = vld [vmem:[%s2447_s5 + $0x18] sm:$0xff] }
 0x345   : > { %1046 = vrot.lane.b32.xlu0 %v2240_v8, %s1996_s15  ;;  %v1147_v8 = vld [vmem:[%s2445_s3 + $0x18] sm:$0xff] }
 0x346   : > { %1727 = vmatpush3.msra.mxu0 %v1147_v8 }
 0x347   : > { %1728 = vmatprep.subr.mxu0 %v1984_v0 }
 0x348   : > { %1729 = vmatpush3.msra.mxu0 %v1146_v13 }
 0x349   : > { %1730 = vmatprep.subr.mxu0 %v1984_v0 }
 0x34a   : > { %1731 = vmatpush3.msra.mxu0 %v1145_v14 }
 0x34b   : > { %1732 = vmatprep.subr.mxu0 %v1984_v0 }
 0x34c   : > { %1733 = vmatpush3.msra.mxu0 %v1144_v15 }
 0x34d   : > { %1748 = vmatprep.subr.mxu0 %v1984_v0 }
 0x383   : > { %v545_v55 = vpop.xlane.xlu0 %544 }
 0x384   : > { %1842 = vrcp.f32 %v545_v55  ;;  %v1341_v55 = vld [vmem:[%s2447_s5 + $0x8] sm:$0xff] }
 0x387   : > { %v549_v56 = vpop.permute.xlu0 %548  ;;  %v711_v57 = vpop.xlane.xlu1 %710 }
 0x388   : > { %1844 = vrcp.f32 %v711_v57  ;;  %1692 = vmatpush3.msra.mxu1 %v549_v56  ;;  %v1340_v56 = vld [vmem:[%s2447_s5] sm:$0xff] }
 0x389   : > { %1701 = vmatprep.subr.mxu1 %v1984_v0  ;;  %v1625_v57 = vld [vmem:[%s2448_s6 + $0x4] ss:$0 sm:$0xff] }
 0x38f   : > { %v1043_v59 = vpop.xlane.xlu1 %1042 }
 0x390   : > { %1846 = vrcp.f32 %v1043_v59 }
 0x391   : > { %v1843_v58 = vpop.eup %1842 }
 0x392   : > { %v547_v60 = vmul.f32 %v1843_v58, %v1835_v43 }
 0x393   : > { %v881_v63 = vpop.permute.xlu1 %880 }
 0x394   : > { %1694 = vmatmul.mubr.msk.f32.vlgmr.msra.gmra.mxu1 %vm460_vm2, %v547_v60  ;;  %1122 = vst.msk [vmem:[%s370_s23] sm:$0xff] %vm460_vm2, %v547_v60 }
 0x395   : > { %v1845_v61 = vpop.eup %1844  ;;  %1702 = vmatpush3.msra.mxu1 %v715_v54  ;;  %1703 = vmatprep.mubr.msk.f32.mxu1 %vm1985_vm0, %v1984_v0  ;;  %v1342_v54 = vld [vmem:[%s2447_s5 + $0x10] sm:$0xff] }
 0x396   : > { %1711 = vmatprep.subr.mxu1 %v1984_v0  ;;  %v713_v62 = vmul.f32 %v1845_v61, %v1837_v45 }
 0x398   : > { %1704 = vmatmul.mubr.msk.f32.vlgmr.msra.gmra.mxu1 %vm460_vm2, %v713_v62  ;;  %1123 = vst.msk [vmem:[%s370_s23 + $0x8] sm:$0xff] %vm460_vm2, %v713_v62 }
 0x399   : > { %1712 = vmatpush3.msra.mxu1 %v881_v63  ;;  %1713 = vmatprep.mubr.msk.f32.mxu1 %vm1985_vm0, %v1984_v0 }
 0x39a   : > { %1721 = vmatprep.subr.mxu1 %v1984_v0 }
 0x39d   : > { %v1847_v2 = vpop.eup %1846 }
 0x39e   : > { %v1045_v6 = vmul.f32 %v1847_v2, %v1839_v47 }
 0x3a0   : > { %1125 = vst.msk [vmem:[%s370_s23 + $0x18] sm:$0xff] %vm460_vm2, %v1045_v6 }
 0x3b8   : > { %v877_v1 = vpop.xlane.xlu0 %876 }
 0x3b9   : > { %1848 = vrcp.f32 %v877_v1 }
 0x3bc   : > { %v1047_v7 = vpop.permute.xlu0 %1046 }
 0x3c6   : > { %v1849_v3 = vpop.eup %1848 }
 0x3c7   : > { %v879_v4 = vmul.f32 %v1849_v3, %v1841_v52  ;;  %v1344_v52 = vld [vmem:[%s2447_s5 + $0x20] sm:$0xff] }
 0x3c9   : > { %1714 = vmatmul.mubr.msk.f32.vlgmr.msra.gmra.mxu1 %vm460_vm2, %v879_v4  ;;  %1124 = vst.msk [vmem:[%s370_s23 + $0x10] sm:$0xff] %vm460_vm2, %v879_v4  ;;  %s1472_s23 = sshll.u32 %s358_s10, 4  ;;  %s1473_s23 = int_to_ptr.vmem [resolvable:$true] %s1472_s23 }
 0x3ca   : > { %1722 = vmatpush3.msra.mxu1 %v1047_v7  ;;  %1723 = vmatprep.mubr.msk.f32.mxu1 %vm1985_vm0, %v1984_v0  ;;  %s1912_s21 = scalar_lea.vmem %s1473_s23, 128  ;;  %p1919_p2 = scmp.lt.s32.totalorder %s1473_s23, %s1917_s19 }
 0x3cb   : > { %1737 = vmatprep.subr.mxu1 %v1984_v0  ;;  %p1913_p3 = scmp.ne.s32.totalorder %s1473_s23, %s1912_s21 }
 0x3cd   : > { %1724 = vmatmul.mubr.msk.f32.vlgmr.msra.gmra.mxu1 %vm460_vm2, %v1045_v6  ;;  %p1914_p8 = pnand %p1913_p3, %p2470_p7 }
 0x3ce   : > { %1745 = vmatprep.mubr.msk.f32.mxu1 %vm1985_vm0, %v1984_v0  ;;  %1738 = vmatpush3.msra.mxu1 %v1257_v37 }
 0x3cf   : > { %1739 = vmatprep.subr.mxu1 %v1984_v0  ;;  %p1915_p10 = pneg %p1914_p8 }
 0x3d0   : > { %1740 = vmatpush3.msra.mxu1 %v1256_v38 }
 0x3d1   : > { %1741 = vmatprep.subr.mxu1 %v1984_v0 }
 0x454   : > { %v620_v9 = vpop.f32.mrf.mxu1 }
 0x456   : > { %v1695_v10 = vpop.f32.mrf.mxu1 }
 0x458   : > { %v786_v11 = vpop.f32.mrf.mxu1 }
 0x459   : > { %1127 = vrot.lane.b32.xlu1 %v786_v11, %s1997_s13 }
 0x45a   : > { %v1705_v12 = vpop.f32.mrf.mxu1 }
 0x489   : > { %v952_v16 = vpop.f32.mrf.mxu1 }
 0x48a   : > { %1131 = vrot.lane.b32.xlu0 %v952_v16, %s1998_s20 }
 0x48b   : > { %v1715_v17 = vpop.f32.mrf.mxu1 }
 0x48d   : > { %v1118_v18 = vpop.f32.mrf.mxu1 }
 0x48e   : > { %1135 = vrot.lane.b32.xlu1 %v1118_v18, %s1999_s14  ;;  %v1629_v18 = vld [vmem:[%s2448_s6 + $0x6] ss:$0 sm:$0xff]  ;;  %s1632_s14 = sshll.u32 %s2067_s9, 7  ;;  %s1918_s9 = scalar_lea.vmem %s1917_s19, 256 }
 0x48f   : > { %v1725_v19 = vpop.f32.mrf.mxu1  ;;  %s1470_s13 = scalar_lea.hbm %s2449_s7, %s1632_s14  ;;  %p1920_p4 = scmp.lt.s32.totalorder %s1918_s9, %s1912_s21 }
 0x491   : > { %p1921_p5 = por %p1920_p4, %p1919_p2 }
 0x493   : > { %p1922_p9 = pnand %p1921_p5, %p1915_p10 }
 0x4cb   : > { %v1128_v20 = vpop.permute.xlu1 %1127 }
 0x4cc   : > { %v1138_v22 = vsel %vm460_vm2, %v620_v9, %v1128_v20  ;;  %v1630_v20 = vld [vmem:[%s2448_s6 + $0x7] ss:$0 sm:$0xff] }
 0x4fc   : > { %v1132_v21 = vpop.permute.xlu0 %1131 }
 0x4fd   : > { %v1140_v23 = vsel %vm1139_vm4, %v1138_v22, %v1132_v21 }
 0x500   : > { %v1136_v24 = vpop.permute.xlu1 %1135 }
 0x501   : > { %v1142_v25 = vsel %vm1141_vm5, %v1140_v23, %v1136_v24 }
 0x502   : > { %1735 = vmatmul.mubr.msk.f32.vlgmr.msra.gmra.mxu0 %vm383_vm1, %v1142_v25 }
 0x503   : > { %1764 = vmatprep.mubr.msk.f32.mxu0 %vm1985_vm0, %v1984_v0  ;;  %1749 = vmatpush3.msra.mxu0 %v1347_v49 }
 0x504   : > { %1750 = vmatprep.subr.mxu0 %v1984_v0 }
 0x505   : > { %1751 = vmatpush3.msra.mxu0 %v1346_v50 }
 0x506   : > { %1752 = vmatprep.subr.mxu0 %v1984_v0 }
 0x507   : > { %1753 = vmatpush3.msra.mxu0 %v1345_v51 }
 0x508   : > { %1754 = vmatprep.subr.mxu0 %v1984_v0 }
 0x509   : > { %1755 = vmatpush3.msra.mxu0 %v1344_v52 }
 0x50a   : > { %1756 = vmatprep.subr.mxu0 %v1984_v0 }
 0x50b   : > { %1757 = vmatpush3.msra.mxu0 %v1343_v53 }
 0x50c   : > { %1758 = vmatprep.subr.mxu0 %v1984_v0 }
 0x50d   : > { %1759 = vmatpush3.msra.mxu0 %v1342_v54 }
 0x50e   : > { %1760 = vmatprep.subr.mxu0 %v1984_v0 }
 0x50f   : > { %1761 = vmatpush3.msra.mxu0 %v1341_v55 }
 0x510   : > { %1762 = vmatprep.subr.mxu0 %v1984_v0 }
 0x511   : > { %1763 = vmatpush3.msra.mxu0 %v1340_v56 }
 0x5c2   : > { %v1221_v27 = vpop.f32.mrf.mxu0 }
 0x5c3   : > { %v1222_v28 = vadd.f32 %v1621_v26, %v1221_v27 }
 0x5c4   : > { %v1736_v29 = vpop.f32.mrf.mxu0 }
 0x5c5   : > { %v1227_v30 = vadd.f32 %v1222_v28, %v2229_v5  ;;  %v1255_v5 = vld [vmem:[%s2446_s4 + $0x8] sm:$0xff] }
 0x5c6   : > { %1742 = vmatpush3.msra.mxu1 %v1255_v5 }
 0x5c7   : > { %v1228_v31 = vsel %vm383_vm1, %v1227_v30, 0.0  ;;  %1743 = vmatprep.subr.mxu1 %v1984_v0  ;;  %v1627_v0 = vld [vmem:[%s2448_s6 + $0x5] ss:$0 sm:$0xff] }
 0x5c8   : > { %1229 = vadd.xlane.f32.xlu0 %v1228_v31  ;;  %1744 = vmatpush3.msra.mxu1 %v1254_v39 }
 0x651   : > { %v1230_v32 = vpop.xlane.xlu0 %1229 }
 0x652   : > { %v1232_v33 = vmul.f32 0.03125, %v1230_v32 }
 0x654   : > { %v1233_v34 = vsub.f32 %v1227_v30, %v1232_v33 }
 0x656   : > { %v1234_v35 = vmul.f32 %v1233_v34, %v1233_v34 }
 0x658   : > { %v1235_v36 = vsel %vm383_vm1, %v1234_v35, 0.0 }
 0x659   : > { %1236 = vadd.xlane.f32.xlu1 %v1235_v36 }
 0x6e2   : > { %v1237_v40 = vpop.xlane.xlu1 %1236 }
 0x6e3   : > { %v1238_v41 = vmul.f32 0.03125, %v1237_v40 }
 0x6e5   : > { %v1239_v42 = vadd.f32 1e-12, %v1238_v41 }
 0x6e7   : > { %1850 = vrsqrt.f32 %v1239_v42 }
 0x6f4   : > { %v1851_v43 = vpop.eup %1850 }
 0x6f5   : > { %v1241_v45 = vmul.f32 %v1851_v43, %v1233_v34 }
 0x6f7   : > { %v1246_v47 = vmul.f32 %v1623_v44, %v1241_v45 }
 0x6f9   : > { %v1251_v48 = vadd.f32 %v1624_v46, %v1246_v47 }
 0x6fb   : > { %1746 = vmatmul.mubr.msk.f32.vlgmr.msra.gmra.mxu1 %vm383_vm1, %v1251_v48 }
 0x7bb   : > { %v1331_v58 = vpop.f32.mrf.mxu1 }
 0x7bc   : > { %v1332_v59 = vadd.f32 %v1625_v57, %v1331_v58 }
 0x7bd   : > { %v1747_v60 = vpop.f32.mrf.mxu1 }
 0x7be   : > { %v1336_v61 = vmul.f32 0.70710677, %v1332_v59  ;;  %v1335_v63 = vmul.f32 0.5, %v1332_v59 }
 0x7c0   : > { %1852 = verf.f32 %v1336_v61 }
 0x7cd   : > { %v1853_v62 = vpop.eup %1852 }
 0x7ce   : > { %v1338_v1 = vadd.f32 1.0, %v1853_v62 }
 0x7d0   : > { %v1339_v2 = vmul.f32 %v1338_v1, %v1335_v63 }
 0x7d2   : > { %1765 = vmatmul.mubr.msk.f32.vlgmr.msra.gmra.mxu0 %vm1352_vm6, %v1339_v2 }
 0x892   : > { %v1422_v3 = vpop.f32.mrf.mxu0 }
 0x893   : > { %v1423_v4 = vadd.f32 %v1627_v0, %v1422_v3 }
 0x894   : > { %v1766_v6 = vpop.f32.mrf.mxu0 }
 0x895   : > { %v1428_v7 = vadd.f32 %v1423_v4, %v1251_v48 }
 0x897   : > { %v1429_v8 = vsel %vm383_vm1, %v1428_v7, 0.0 }
 0x898   : > { %1430 = vadd.xlane.f32.xlu0 %v1429_v8 }
 0x921   : > { %v1431_v9 = vpop.xlane.xlu0 %1430 }
 0x922   : > { %v1432_v10 = vmul.f32 0.03125, %v1431_v9 }
 0x924   : > { %v1433_v11 = vsub.f32 %v1428_v7, %v1432_v10 }
 0x926   : > { %v1434_v12 = vmul.f32 %v1433_v11, %v1433_v11 }
 0x928   : > { %v1435_v13 = vsel %vm383_vm1, %v1434_v12, 0.0 }
 0x929   : > { %1436 = vadd.xlane.f32.xlu0 %v1435_v13 }
 0x9b2   : > { %v1437_v14 = vpop.xlane.xlu0 %1436 }
 0x9b3   : > { %v1438_v15 = vmul.f32 0.03125, %v1437_v14 }
 0x9b5   : > { %v1439_v16 = vadd.f32 1e-12, %v1438_v15 }
 0x9b7   : > { %1854 = vrsqrt.f32 %v1439_v16 }
 0x9c4   : > { %v1855_v17 = vpop.eup %1854 }
 0x9c5   : > { %v1441_v19 = vmul.f32 %v1855_v17, %v1433_v11 }
 0x9c7   : > { %v1446_v21 = vmul.f32 %v1629_v18, %v1441_v19 }
 0x9c9   : > { %v1451_v22 = vadd.f32 %v1630_v20, %v1446_v21 }
 0x9cb   : > { %1452 = vst.msk [vmem:[%s358_s10] sm:$0xff] %vm383_vm1, %v1451_v22 }
 0x9cc   : > { %1925 = shalt.err (!%p1922_p9)
}
 0x9cd   : > { %s1926_s12 = scalar_lea.hbm %s1470_s13, 128  ;;  %s1930_s0 = scalar_lea.hbm %s2449_s7, 256 }
 0x9ce   : > { %p1927_p0 = scmp.ne.s32.totalorder %s1470_s13, %s1926_s12  ;;  %p1931_p1 = scmp.lt.s32.totalorder %s1470_s13, %s2449_s7 }
 0x9cf   : > { %p1932_p6 = scmp.lt.s32.totalorder %s1930_s0, %s1926_s12 }
 0x9d0   : > { %p1928_p11 = pnand %p1927_p0, %p2470_p7 }
 0x9d1   : > { %p1933_p13 = por %p1932_p6, %p1931_p1 }
 0x9d2   : > { %p1929_p12 = pneg %p1928_p11 }
 0x9d4   : > { %p1934_p3 = pnand %p1933_p13, %p1929_p12 }
 0x9d6   : > { %1937 = shalt.err (!%p1934_p3)
}
 0x9d7   : > { %1771 = dma.vmem_to_hbm [thread:$0]  (%p2470_p7), %s1473_s23, 128, %s1470_s13, %s1454_s16  }
 0x9d8 PF: > { %s1488_s10 = sand.u32 1, %s1968_s27   ;;  %p2471_p8 = scmp.ne.s32.totalorder %s2460_s18, 0 }
 0x9d9   : > { %p2472_p10 = scmp.ge.s32.totalorder %s1980_s30, 2  ;;  %s1489_s22 = scalar_lea.sflag [#allocation4], %s1488_s10 }
 0x9db   : > { %p1781_p2 = pnand %p2472_p10, %p2471_p8 }
 0x9dd   : > { %p1782_p4 = pneg %p1781_p2 }
 0x9df   : > { %1963 = dma.done.wait (%p1782_p4), %s1489_s22, 128  }
 0x9e0   : > { %1965 = vsyncadd (%p1782_p4), %s1489_s22, 4294967168  ;;  %s2473_s24 = sld [smem:[#allocation11_spill]]  ;;  %p25_p5 = scmp.ge.s32.totalorder %s2071_s11, 4  }
 0x9e1   : > { %s2474_s27 = smov %s1972_s28  ;;  %s2475_s28 = smov %s1976_s29 }
 0x9e2   : > { %s2477_s30 = smov %s2071_s11  ;;  %27 = sbr.rel (!%p25_p5) target bundleno = 9 (0x9), region = 118 }
 0x9e6   : > { %s2476_s29 = smov %s2473_s24 }
 0x9e7   :  { %1502 = vsyncpa [#allocation3], 1 }
 0x9e8   :  { %1504 = vsyncpa [#allocation3 + $0x1], 1 }
 0x9e9   :  { %1505 = vsyncpa [#allocation6], 1 }
 0x9ea   :  { %1507 = vsyncpa [#allocation6 + $0x1], 1 }
 0x9eb   :  { %1508 = vsyncpa [#allocation4], 1 }
 0x9ec   :  { %1510 = vsyncpa [#allocation4 + $0x1], 1 }

</bundles_post_ra>
